<compile_context>
chip_gen: v5e
topology: v5e:2x2
jax: 0.10.0
libtpu: 0.0.40
codegen_flags: <defaults>
</compile_context>

<pallas_src>
import functools

import jax
import jax.numpy as jnp
from jax import lax
from jax.experimental import pallas as pl
from jax.experimental.pallas import tpu as pltpu

EPS = 1e-5  # PyTorch LayerNorm default


def _round_up(x, m):
    return ((x + m - 1) // m) * m


def _layernorm(x, gamma, beta):
    mu = jnp.mean(x, axis=-1, keepdims=True)
    var = jnp.mean((x - mu) ** 2, axis=-1, keepdims=True)  # biased, like torch
    return (x - mu) * lax.rsqrt(var + EPS) * gamma + beta


def fusion_kernel(
    f1_ref, f2_ref,                       # per-tile activations (TM, d1) / (TM, d2)
    gw1a_ref, gw1b_ref,                   # gate fc1 weight, split per input half
    wpa_ref, wpb_ref,                     # packed [residual_proj | fc1] weights, per half
    fc2w_ref,                             # enricher fc2 weight
    pp_ref,                               # packed small params (14, PACK_W)
    out_ref,
    *, d1, d2, hidden, nb,
):
    f1 = f1_ref[...].astype(jnp.float32)               # (TM, d1)
    f2 = f2_ref[...].astype(jnp.float32)               # (TM, d2)
    pp = pp_ref[...]                                    # (14, PACK_W) f32

    # statically sliced packed params (each row starts at lane 0)
    ng1, ng2 = pp[0:1, :d1], pp[1:2, :d2]
    nb1, nb2 = pp[2:3, :d1], pp[3:4, :d2]
    gb1 = pp[4:5, :hidden]
    gw2_row = pp[5:6, :hidden]
    gb2 = pp[6:7, 0:1]
    res_b = pp[7:8, :d1]
    fc1_b = pp[8:9, :d1]
    ln1_g, ln1_b = pp[9:10, :d1], pp[10:11, :d1]
    fc2_b = pp[11:12, :d1]
    ln2_g, ln2_b = pp[12:13, :d1], pp[13:14, :d1]

    din = float(d1 + d2)

    # LayerNorm over the virtual concat [f1, f2] without materializing it.
    mean = (jnp.sum(f1, -1, keepdims=True) + jnp.sum(f2, -1, keepdims=True)) / din
    c1 = f1 - mean
    c2 = f2 - mean
    var = (jnp.sum(c1 * c1, -1, keepdims=True) + jnp.sum(c2 * c2, -1, keepdims=True)) / din
    inv = lax.rsqrt(var + EPS)
    xn1 = c1 * inv * ng1 + nb1
    xn2 = c2 * inv * ng2 + nb2

    # gate MLP: relu(LN(cat) @ W1 + b1) -> VPU dot with the 1-column W2 row
    h = (jnp.dot(xn1, gw1a_ref[...], preferred_element_type=jnp.float32)
         + jnp.dot(xn2, gw1b_ref[...], preferred_element_type=jnp.float32)
         + gb1)
    h = jnp.maximum(h, 0.0)
    g_logit = jnp.sum(h * gw2_row, axis=-1, keepdims=True) + gb2      # (TM, 1)
    valid = (jnp.sum(jnp.abs(f2), axis=-1, keepdims=True) != 0.0).astype(jnp.float32)
    g = jax.nn.sigmoid(g_logit) * valid                               # (TM, 1)

    # enricher: one fused matmul per input half produces [residual | fc1] lanes
    r = (jnp.dot(f1, wpa_ref[...], preferred_element_type=jnp.float32)
         + jnp.dot(f2, wpb_ref[...], preferred_element_type=jnp.float32))   # (TM, 2*nb)
    residual = r[:, :d1] + res_b
    o = r[:, nb:nb + d1] + fc1_b
    o = jnp.maximum(_layernorm(o, ln1_g, ln1_b), 0.0)                 # dropout1 = identity (eval)
    o = jnp.dot(o, fc2w_ref[...], preferred_element_type=jnp.float32) + fc2_b
    o = _layernorm(o, ln2_g, ln2_b)                                   # dropout2 = identity (eval)
    enriched = jnp.maximum(o + residual, 0.0)

    out_ref[...] = (g * enriched + (1.0 - g) * f1).astype(out_ref.dtype)


def gated_transcriptomics_fusion(feat_1, feat_2, params, *, tile_rows=256):
    """feat_1: (..., D1), feat_2: (..., D2) -> (..., D1)."""
    d1 = feat_1.shape[-1]
    d2 = feat_2.shape[-1]
    hidden = params["gate_w1"].shape[-1]
    lead = feat_1.shape[:-1]
    rows = 1
    for s in lead:
        rows *= s

    f1 = feat_1.reshape(rows, d1)
    f2 = feat_2.reshape(rows, d2)

    # Tile rows: multiple of 8, no larger than needed; no HBM padding — the
    # ragged last block (if any) is handled by the pipeline's masked writes.
    tm = max(8, min(_round_up(tile_rows, 8), _round_up(rows, 8)))
    grid = (pl.cdiv(rows, tm),)

    # --- weight packing (tiny; folds into constants under jit) -------------
    nbound = _round_up(d1, 128)                 # 128-aligned sub-block stride
    gw1 = params["gate_w1"].astype(jnp.float32)               # (din, hidden)
    gw1_a, gw1_b = gw1[:d1], gw1[d1:]
    rw = params["res_w"].astype(jnp.float32)                  # (din, d1)
    w1 = params["fc1_w"].astype(jnp.float32)                  # (din, d1)

    def pack_side(res_part, fc1_part):
        k = res_part.shape[0]
        w = jnp.zeros((k, 2 * nbound), jnp.float32)
        w = w.at[:, :d1].set(res_part)
        w = w.at[:, nbound:nbound + d1].set(fc1_part)
        return w

    wpa = pack_side(rw[:d1], w1[:d1])           # (d1, 2*nbound)
    wpb = pack_side(rw[d1:], w1[d1:])           # (d2, 2*nbound)
    fc2_w = params["fc2_w"].astype(jnp.float32)

    pack_w = _round_up(max(d1, d2, hidden, 1), 128)

    def vec(x):
        v = jnp.asarray(x, jnp.float32).reshape(-1)
        return jnp.pad(v, (0, pack_w - v.shape[0]))

    ng = params["norm_g"].reshape(-1)
    nbeta = params["norm_b"].reshape(-1)
    pp = jnp.stack([
        vec(ng[:d1]), vec(ng[d1:]),
        vec(nbeta[:d1]), vec(nbeta[d1:]),
        vec(params["gate_b1"]), vec(params["gate_w2"]), vec(params["gate_b2"]),
        vec(params["res_b"]), vec(params["fc1_b"]),
        vec(params["ln1_g"]), vec(params["ln1_b"]),
        vec(params["fc2_b"]), vec(params["ln2_g"]), vec(params["ln2_b"]),
    ])                                          # (14, pack_w)

    kernel = functools.partial(fusion_kernel, d1=d1, d2=d2, hidden=hidden, nb=nbound)

    def full_spec(w):
        # whole (small) weight resident in VMEM for every grid step
        return pl.BlockSpec(w.shape, lambda i: (0, 0))

    out = pl.pallas_call(
        kernel,
        out_shape=jax.ShapeDtypeStruct((rows, d1), feat_1.dtype),
        grid_spec=pltpu.PrefetchScalarGridSpec(
            num_scalar_prefetch=0,
            grid=grid,
            in_specs=[
                pl.BlockSpec((tm, d1), lambda i: (i, 0)),
                pl.BlockSpec((tm, d2), lambda i: (i, 0)),
                full_spec(gw1_a), full_spec(gw1_b),
                full_spec(wpa), full_spec(wpb),
                full_spec(fc2_w), full_spec(pp),
            ],
            out_specs=pl.BlockSpec((tm, d1), lambda i: (i, 0)),
        ),
        compiler_params=pltpu.CompilerParams(
            dimension_semantics=("parallel",)),   # row axis shards across TCs (v7x)
    )(f1, f2, gw1_a, gw1_b, wpa, wpb, fc2_w, pp)

    return out.reshape(*lead, d1)


def init_params(key, d1, d2, hidden):
    """Deterministic parameter init (shapes match the PyTorch module)."""
    din = d1 + d2
    ks = jax.random.split(key, 8)

    def lin(k, fan_in, fan_out):
        bound = 1.0 / jnp.sqrt(fan_in)
        kw, kb = jax.random.split(k)
        w = jax.random.uniform(kw, (fan_in, fan_out), jnp.float32, -bound, bound)
        b = jax.random.uniform(kb, (1, fan_out), jnp.float32, -bound, bound)
        return w, b

    gate_w1, gate_b1 = lin(ks[0], din, hidden)
    gate_w2, gate_b2 = lin(ks[1], hidden, 1)
    fc1_w, fc1_b = lin(ks[2], din, d1)
    fc2_w, fc2_b = lin(ks[3], d1, d1)
    res_w, res_b = lin(ks[4], din, d1)

    return {
        "norm_g": jnp.ones((1, din), jnp.float32),
        "norm_b": jnp.zeros((1, din), jnp.float32),
        "gate_w1": gate_w1, "gate_b1": gate_b1,
        "gate_w2": gate_w2, "gate_b2": gate_b2,
        "res_w": res_w, "res_b": res_b,
        "fc1_w": fc1_w, "fc1_b": fc1_b,
        "ln1_g": jnp.ones((1, d1), jnp.float32),
        "ln1_b": jnp.zeros((1, d1), jnp.float32),
        "fc2_w": fc2_w, "fc2_b": fc2_b,
        "ln2_g": jnp.ones((1, d1), jnp.float32),
        "ln2_b": jnp.zeros((1, d1), jnp.float32),
    }


def reference_forward(feat_1, feat_2, p):
    """Pure-JAX reference mirroring the PyTorch forward (eval mode)."""
    cat = jnp.concatenate([feat_1, feat_2], axis=-1)
    valid = (jnp.sum(jnp.abs(feat_2), axis=-1, keepdims=True) != 0).astype(jnp.float32)
    x_n = _layernorm(cat, p["norm_g"][0], p["norm_b"][0])
    h = jnp.maximum(x_n @ p["gate_w1"] + p["gate_b1"][0], 0.0)
    g = jax.nn.sigmoid(h @ p["gate_w2"] + p["gate_b2"][0]) * valid
    residual = cat @ p["res_w"] + p["res_b"][0]
    o = cat @ p["fc1_w"] + p["fc1_b"][0]
    o = jnp.maximum(_layernorm(o, p["ln1_g"][0], p["ln1_b"][0]), 0.0)
    o = o @ p["fc2_w"] + p["fc2_b"][0]
    o = _layernorm(o, p["ln2_g"][0], p["ln2_b"][0])
    enriched = jnp.maximum(o + residual, 0.0)
    return g * enriched + (1.0 - g) * feat_1


if __name__ == "__main__":
    B, N = 2, 8          # batch, tokens  -> 16 rows
    D1, D2, HID = 32, 16, 32

    key = jax.random.PRNGKey(0)
    k1, k2, kp = jax.random.split(key, 3)
    feat_1 = jax.random.normal(k1, (B, N, D1), jnp.float32)
    feat_2 = jax.random.normal(k2, (B, N, D2), jnp.float32)
    # make one token's feat_2 all-zero to exercise the `valid` mask
    feat_2 = feat_2.at[0, 0].set(0.0)

    params = init_params(kp, D1, D2, HID)

    out = gated_transcriptomics_fusion(feat_1, feat_2, params)   # tile_rows=256 default
    out = jax.block_until_ready(out)

    ref = reference_forward(
        feat_1.reshape(-1, D1), feat_2.reshape(-1, D2), params
    ).reshape(B, N, D1)

    assert out.shape == (B, N, D1)
    assert jnp.allclose(out, ref, atol=2e-5, rtol=2e-5), "mismatch vs JAX reference"
    # TODO(synk): dropout layers are identity here (eval mode); training-time
    # stochastic dropout is not implemented in the kernel.
    print("KERNEL_OK")
</pallas_src>

<mosaic_0001>
module attributes {stable_mosaic.version = 11 : i64} {
  func.func @fusion_kernel(%arg0: i32, %arg1: memref<16x32xf32, #tpu.memory_space<vmem>>, %arg2: memref<16x16xf32, #tpu.memory_space<vmem>>, %arg3: memref<32x32xf32, #tpu.memory_space<vmem>>, %arg4: memref<16x32xf32, #tpu.memory_space<vmem>>, %arg5: memref<32x256xf32, #tpu.memory_space<vmem>>, %arg6: memref<16x256xf32, #tpu.memory_space<vmem>>, %arg7: memref<32x32xf32, #tpu.memory_space<vmem>>, %arg8: memref<14x128xf32, #tpu.memory_space<vmem>>, %arg9: memref<16x32xf32, #tpu.memory_space<vmem>>) attributes {dimension_semantics = [#tpu.dimension_semantics<parallel>], iteration_bounds = array<i64: 1>, scalar_prefetch = 0 : i64, scratch_operands = 0 : i64, tpu.core_type = #tpu.core_type<tc>, window_params = [{transform_indices = @transform_0, window_bounds = array<i64: 16, 32>}, {transform_indices = @transform_1, window_bounds = array<i64: 16, 16>}, {pipeline_mode = #tpu.pipeline_mode<synchronous>, transform_indices = @transform_2, window_bounds = array<i64: 32, 32>}, {pipeline_mode = #tpu.pipeline_mode<synchronous>, transform_indices = @transform_3, window_bounds = array<i64: 16, 32>}, {pipeline_mode = #tpu.pipeline_mode<synchronous>, transform_indices = @transform_4, window_bounds = array<i64: 32, 256>}, {pipeline_mode = #tpu.pipeline_mode<synchronous>, transform_indices = @transform_5, window_bounds = array<i64: 16, 256>}, {pipeline_mode = #tpu.pipeline_mode<synchronous>, transform_indices = @transform_6, window_bounds = array<i64: 32, 32>}, {pipeline_mode = #tpu.pipeline_mode<synchronous>, transform_indices = @transform_7, window_bounds = array<i64: 14, 128>}, {transform_indices = @transform_8, window_bounds = array<i64: 16, 32>}]} {
    %c0 = arith.constant 0 : index
    %c0_0 = arith.constant 0 : index
    %0 = vector.load %arg1[%c0, %c0_0] : memref<16x32xf32, #tpu.memory_space<vmem>>, vector<16x32xf32>
    %c0_1 = arith.constant 0 : index
    %c0_2 = arith.constant 0 : index
    %1 = vector.load %arg2[%c0_1, %c0_2] : memref<16x16xf32, #tpu.memory_space<vmem>>, vector<16x16xf32>
    %c0_3 = arith.constant 0 : index
    %c0_4 = arith.constant 0 : index
    %2 = vector.load %arg8[%c0_3, %c0_4] : memref<14x128xf32, #tpu.memory_space<vmem>>, vector<14x128xf32>
    %3 = vector.extract_strided_slice %2 {offsets = [0, 0], sizes = [1, 32], strides = [1, 1]} : vector<14x128xf32> to vector<1x32xf32>
    %4 = vector.extract_strided_slice %2 {offsets = [1, 0], sizes = [1, 16], strides = [1, 1]} : vector<14x128xf32> to vector<1x16xf32>
    %5 = vector.extract_strided_slice %2 {offsets = [2, 0], sizes = [1, 32], strides = [1, 1]} : vector<14x128xf32> to vector<1x32xf32>
    %6 = vector.extract_strided_slice %2 {offsets = [3, 0], sizes = [1, 16], strides = [1, 1]} : vector<14x128xf32> to vector<1x16xf32>
    %7 = vector.extract_strided_slice %2 {offsets = [4, 0], sizes = [1, 32], strides = [1, 1]} : vector<14x128xf32> to vector<1x32xf32>
    %8 = vector.extract_strided_slice %2 {offsets = [5, 0], sizes = [1, 32], strides = [1, 1]} : vector<14x128xf32> to vector<1x32xf32>
    %9 = vector.extract_strided_slice %2 {offsets = [6, 0], sizes = [1, 1], strides = [1, 1]} : vector<14x128xf32> to vector<1x1xf32>
    %10 = vector.extract_strided_slice %2 {offsets = [7, 0], sizes = [1, 32], strides = [1, 1]} : vector<14x128xf32> to vector<1x32xf32>
    %11 = vector.extract_strided_slice %2 {offsets = [8, 0], sizes = [1, 32], strides = [1, 1]} : vector<14x128xf32> to vector<1x32xf32>
    %12 = vector.extract_strided_slice %2 {offsets = [9, 0], sizes = [1, 32], strides = [1, 1]} : vector<14x128xf32> to vector<1x32xf32>
    %13 = vector.extract_strided_slice %2 {offsets = [10, 0], sizes = [1, 32], strides = [1, 1]} : vector<14x128xf32> to vector<1x32xf32>
    %14 = vector.extract_strided_slice %2 {offsets = [11, 0], sizes = [1, 32], strides = [1, 1]} : vector<14x128xf32> to vector<1x32xf32>
    %15 = vector.extract_strided_slice %2 {offsets = [12, 0], sizes = [1, 32], strides = [1, 1]} : vector<14x128xf32> to vector<1x32xf32>
    %16 = vector.extract_strided_slice %2 {offsets = [13, 0], sizes = [1, 32], strides = [1, 1]} : vector<14x128xf32> to vector<1x32xf32>
    %cst = arith.constant dense<0.000000e+00> : vector<16xf32>
    %17 = vector.multi_reduction <add>, %0, %cst [1] : vector<16x32xf32> to vector<16xf32>
    %18 = vector.shape_cast %17 : vector<16xf32> to vector<16x1xf32>
    %cst_5 = arith.constant dense<0.000000e+00> : vector<16xf32>
    %19 = vector.multi_reduction <add>, %1, %cst_5 [1] : vector<16x16xf32> to vector<16xf32>
    %20 = vector.shape_cast %19 : vector<16xf32> to vector<16x1xf32>
    %21 = arith.addf %18, %20 : vector<16x1xf32>
    %cst_6 = arith.constant 4.800000e+01 : f32
    %22 = vector.broadcast %cst_6 : f32 to vector<16x1xf32>
    %23 = arith.divf %21, %22 : vector<16x1xf32>
    %24 = vector.broadcast %23 : vector<16x1xf32> to vector<16x32xf32>
    %25 = arith.subf %0, %24 : vector<16x32xf32>
    %26 = vector.broadcast %23 : vector<16x1xf32> to vector<16x16xf32>
    %27 = arith.subf %1, %26 : vector<16x16xf32>
    %28 = arith.mulf %25, %25 : vector<16x32xf32>
    %cst_7 = arith.constant dense<0.000000e+00> : vector<16xf32>
    %29 = vector.multi_reduction <add>, %28, %cst_7 [1] : vector<16x32xf32> to vector<16xf32>
    %30 = vector.shape_cast %29 : vector<16xf32> to vector<16x1xf32>
    %31 = arith.mulf %27, %27 : vector<16x16xf32>
    %cst_8 = arith.constant dense<0.000000e+00> : vector<16xf32>
    %32 = vector.multi_reduction <add>, %31, %cst_8 [1] : vector<16x16xf32> to vector<16xf32>
    %33 = vector.shape_cast %32 : vector<16xf32> to vector<16x1xf32>
    %34 = arith.addf %30, %33 : vector<16x1xf32>
    %cst_9 = arith.constant 4.800000e+01 : f32
    %35 = vector.broadcast %cst_9 : f32 to vector<16x1xf32>
    %36 = arith.divf %34, %35 : vector<16x1xf32>
    %cst_10 = arith.constant 9.99999974E-6 : f32
    %37 = vector.broadcast %cst_10 : f32 to vector<16x1xf32>
    %38 = arith.addf %36, %37 : vector<16x1xf32>
    %39 = math.rsqrt %38 : vector<16x1xf32>
    %40 = vector.broadcast %39 : vector<16x1xf32> to vector<16x32xf32>
    %41 = arith.mulf %25, %40 : vector<16x32xf32>
    %42 = vector.broadcast %3 : vector<1x32xf32> to vector<16x32xf32>
    %43 = arith.mulf %41, %42 : vector<16x32xf32>
    %44 = vector.broadcast %5 : vector<1x32xf32> to vector<16x32xf32>
    %45 = arith.addf %43, %44 : vector<16x32xf32>
    %46 = vector.broadcast %39 : vector<16x1xf32> to vector<16x16xf32>
    %47 = arith.mulf %27, %46 : vector<16x16xf32>
    %48 = vector.broadcast %4 : vector<1x16xf32> to vector<16x16xf32>
    %49 = arith.mulf %47, %48 : vector<16x16xf32>
    %50 = vector.broadcast %6 : vector<1x16xf32> to vector<16x16xf32>
    %51 = arith.addf %49, %50 : vector<16x16xf32>
    %c0_11 = arith.constant 0 : index
    %c0_12 = arith.constant 0 : index
    %52 = vector.load %arg3[%c0_11, %c0_12] : memref<32x32xf32, #tpu.memory_space<vmem>>, vector<32x32xf32>
    %cst_13 = arith.constant dense<0.000000e+00> : vector<16x32xf32>
    %53 = tpu.matmul %45, %52, %cst_13 {dimension_numbers = #tpu.dot_dimension_numbers<[1], [0], [0], [1], [0, 0, 1, 1], [], []>} : vector<16x32xf32>, vector<32x32xf32>, vector<16x32xf32> -> vector<16x32xf32>
    %c0_14 = arith.constant 0 : index
    %c0_15 = arith.constant 0 : index
    %54 = vector.load %arg4[%c0_14, %c0_15] : memref<16x32xf32, #tpu.memory_space<vmem>>, vector<16x32xf32>
    %cst_16 = arith.constant dense<0.000000e+00> : vector<16x32xf32>
    %55 = tpu.matmul %51, %54, %cst_16 {dimension_numbers = #tpu.dot_dimension_numbers<[1], [0], [0], [1], [0, 0, 1, 1], [], []>} : vector<16x16xf32>, vector<16x32xf32>, vector<16x32xf32> -> vector<16x32xf32>
    %56 = arith.addf %53, %55 : vector<16x32xf32>
    %57 = vector.broadcast %7 : vector<1x32xf32> to vector<16x32xf32>
    %58 = arith.addf %56, %57 : vector<16x32xf32>
    %cst_17 = arith.constant 0.000000e+00 : f32
    %59 = vector.broadcast %cst_17 : f32 to vector<16x32xf32>
    %60 = arith.maximumf %58, %59 : vector<16x32xf32>
    %61 = vector.broadcast %8 : vector<1x32xf32> to vector<16x32xf32>
    %62 = arith.mulf %60, %61 : vector<16x32xf32>
    %cst_18 = arith.constant dense<0.000000e+00> : vector<16xf32>
    %63 = vector.multi_reduction <add>, %62, %cst_18 [1] : vector<16x32xf32> to vector<16xf32>
    %64 = vector.shape_cast %63 : vector<16xf32> to vector<16x1xf32>
    %65 = vector.broadcast %9 : vector<1x1xf32> to vector<16x1xf32>
    %66 = arith.addf %64, %65 : vector<16x1xf32>
    %67 = math.absf %1 : vector<16x16xf32>
    %cst_19 = arith.constant dense<0.000000e+00> : vector<16xf32>
    %68 = vector.multi_reduction <add>, %67, %cst_19 [1] : vector<16x16xf32> to vector<16xf32>
    %69 = vector.shape_cast %68 : vector<16xf32> to vector<16x1xf32>
    %cst_20 = arith.constant 0.000000e+00 : f32
    %70 = vector.broadcast %cst_20 : f32 to vector<16x1xf32>
    %71 = arith.cmpf one, %69, %70 : vector<16x1xf32>
    %72 = arith.extui %71 : vector<16x1xi1> to vector<16x1xi32>
    %73 = arith.sitofp %72 : vector<16x1xi32> to vector<16x1xf32>
    %74 = arith.negf %66 : vector<16x1xf32>
    %75 = math.exp %74 : vector<16x1xf32>
    %cst_21 = arith.constant 1.000000e+00 : f32
    %76 = vector.broadcast %cst_21 : f32 to vector<16x1xf32>
    %77 = arith.addf %76, %75 : vector<16x1xf32>
    %78 = arith.divf %76, %77 : vector<16x1xf32>
    %79 = arith.mulf %78, %73 : vector<16x1xf32>
    %c0_22 = arith.constant 0 : index
    %c0_23 = arith.constant 0 : index
    %80 = vector.load %arg5[%c0_22, %c0_23] : memref<32x256xf32, #tpu.memory_space<vmem>>, vector<32x256xf32>
    %cst_24 = arith.constant dense<0.000000e+00> : vector<16x256xf32>
    %81 = tpu.matmul %0, %80, %cst_24 {dimension_numbers = #tpu.dot_dimension_numbers<[1], [0], [0], [1], [0, 0, 1, 1], [], []>} : vector<16x32xf32>, vector<32x256xf32>, vector<16x256xf32> -> vector<16x256xf32>
    %c0_25 = arith.constant 0 : index
    %c0_26 = arith.constant 0 : index
    %82 = vector.load %arg6[%c0_25, %c0_26] : memref<16x256xf32, #tpu.memory_space<vmem>>, vector<16x256xf32>
    %cst_27 = arith.constant dense<0.000000e+00> : vector<16x256xf32>
    %83 = tpu.matmul %1, %82, %cst_27 {dimension_numbers = #tpu.dot_dimension_numbers<[1], [0], [0], [1], [0, 0, 1, 1], [], []>} : vector<16x16xf32>, vector<16x256xf32>, vector<16x256xf32> -> vector<16x256xf32>
    %84 = arith.addf %81, %83 : vector<16x256xf32>
    %85 = vector.extract_strided_slice %84 {offsets = [0, 0], sizes = [16, 32], strides = [1, 1]} : vector<16x256xf32> to vector<16x32xf32>
    %86 = vector.broadcast %10 : vector<1x32xf32> to vector<16x32xf32>
    %87 = arith.addf %85, %86 : vector<16x32xf32>
    %88 = vector.extract_strided_slice %84 {offsets = [0, 128], sizes = [16, 32], strides = [1, 1]} : vector<16x256xf32> to vector<16x32xf32>
    %89 = vector.broadcast %11 : vector<1x32xf32> to vector<16x32xf32>
    %90 = arith.addf %88, %89 : vector<16x32xf32>
    %cst_28 = arith.constant dense<0.000000e+00> : vector<16xf32>
    %91 = vector.multi_reduction <add>, %90, %cst_28 [1] : vector<16x32xf32> to vector<16xf32>
    %92 = vector.shape_cast %91 : vector<16xf32> to vector<16x1xf32>
    %cst_29 = arith.constant 3.200000e+01 : f32
    %93 = vector.broadcast %cst_29 : f32 to vector<16x1xf32>
    %94 = arith.divf %92, %93 : vector<16x1xf32>
    %95 = vector.broadcast %94 : vector<16x1xf32> to vector<16x32xf32>
    %96 = arith.subf %90, %95 : vector<16x32xf32>
    %97 = arith.mulf %96, %96 : vector<16x32xf32>
    %cst_30 = arith.constant dense<0.000000e+00> : vector<16xf32>
    %98 = vector.multi_reduction <add>, %97, %cst_30 [1] : vector<16x32xf32> to vector<16xf32>
    %99 = vector.shape_cast %98 : vector<16xf32> to vector<16x1xf32>
    %cst_31 = arith.constant 3.200000e+01 : f32
    %100 = vector.broadcast %cst_31 : f32 to vector<16x1xf32>
    %101 = arith.divf %99, %100 : vector<16x1xf32>
    %102 = vector.broadcast %94 : vector<16x1xf32> to vector<16x32xf32>
    %103 = arith.subf %90, %102 : vector<16x32xf32>
    %cst_32 = arith.constant 9.99999974E-6 : f32
    %104 = vector.broadcast %cst_32 : f32 to vector<16x1xf32>
    %105 = arith.addf %101, %104 : vector<16x1xf32>
    %106 = math.rsqrt %105 : vector<16x1xf32>
    %107 = vector.broadcast %106 : vector<16x1xf32> to vector<16x32xf32>
    %108 = arith.mulf %103, %107 : vector<16x32xf32>
    %109 = vector.broadcast %12 : vector<1x32xf32> to vector<16x32xf32>
    %110 = arith.mulf %108, %109 : vector<16x32xf32>
    %111 = vector.broadcast %13 : vector<1x32xf32> to vector<16x32xf32>
    %112 = arith.addf %110, %111 : vector<16x32xf32>
    %cst_33 = arith.constant 0.000000e+00 : f32
    %113 = vector.broadcast %cst_33 : f32 to vector<16x32xf32>
    %114 = arith.maximumf %112, %113 : vector<16x32xf32>
    %c0_34 = arith.constant 0 : index
    %c0_35 = arith.constant 0 : index
    %115 = vector.load %arg7[%c0_34, %c0_35] : memref<32x32xf32, #tpu.memory_space<vmem>>, vector<32x32xf32>
    %cst_36 = arith.constant dense<0.000000e+00> : vector<16x32xf32>
    %116 = tpu.matmul %114, %115, %cst_36 {dimension_numbers = #tpu.dot_dimension_numbers<[1], [0], [0], [1], [0, 0, 1, 1], [], []>} : vector<16x32xf32>, vector<32x32xf32>, vector<16x32xf32> -> vector<16x32xf32>
    %117 = vector.broadcast %14 : vector<1x32xf32> to vector<16x32xf32>
    %118 = arith.addf %116, %117 : vector<16x32xf32>
    %cst_37 = arith.constant dense<0.000000e+00> : vector<16xf32>
    %119 = vector.multi_reduction <add>, %118, %cst_37 [1] : vector<16x32xf32> to vector<16xf32>
    %120 = vector.shape_cast %119 : vector<16xf32> to vector<16x1xf32>
    %cst_38 = arith.constant 3.200000e+01 : f32
    %121 = vector.broadcast %cst_38 : f32 to vector<16x1xf32>
    %122 = arith.divf %120, %121 : vector<16x1xf32>
    %123 = vector.broadcast %122 : vector<16x1xf32> to vector<16x32xf32>
    %124 = arith.subf %118, %123 : vector<16x32xf32>
    %125 = arith.mulf %124, %124 : vector<16x32xf32>
    %cst_39 = arith.constant dense<0.000000e+00> : vector<16xf32>
    %126 = vector.multi_reduction <add>, %125, %cst_39 [1] : vector<16x32xf32> to vector<16xf32>
    %127 = vector.shape_cast %126 : vector<16xf32> to vector<16x1xf32>
    %cst_40 = arith.constant 3.200000e+01 : f32
    %128 = vector.broadcast %cst_40 : f32 to vector<16x1xf32>
    %129 = arith.divf %127, %128 : vector<16x1xf32>
    %130 = vector.broadcast %122 : vector<16x1xf32> to vector<16x32xf32>
    %131 = arith.subf %118, %130 : vector<16x32xf32>
    %cst_41 = arith.constant 9.99999974E-6 : f32
    %132 = vector.broadcast %cst_41 : f32 to vector<16x1xf32>
    %133 = arith.addf %129, %132 : vector<16x1xf32>
    %134 = math.rsqrt %133 : vector<16x1xf32>
    %135 = vector.broadcast %134 : vector<16x1xf32> to vector<16x32xf32>
    %136 = arith.mulf %131, %135 : vector<16x32xf32>
    %137 = vector.broadcast %15 : vector<1x32xf32> to vector<16x32xf32>
    %138 = arith.mulf %136, %137 : vector<16x32xf32>
    %139 = vector.broadcast %16 : vector<1x32xf32> to vector<16x32xf32>
    %140 = arith.addf %138, %139 : vector<16x32xf32>
    %141 = arith.addf %140, %87 : vector<16x32xf32>
    %cst_42 = arith.constant 0.000000e+00 : f32
    %142 = vector.broadcast %cst_42 : f32 to vector<16x32xf32>
    %143 = arith.maximumf %141, %142 : vector<16x32xf32>
    %144 = vector.broadcast %79 : vector<16x1xf32> to vector<16x32xf32>
    %145 = arith.mulf %144, %143 : vector<16x32xf32>
    %cst_43 = arith.constant 1.000000e+00 : f32
    %146 = vector.broadcast %cst_43 : f32 to vector<16x1xf32>
    %147 = arith.subf %146, %79 : vector<16x1xf32>
    %148 = vector.broadcast %147 : vector<16x1xf32> to vector<16x32xf32>
    %149 = arith.mulf %148, %0 : vector<16x32xf32>
    %150 = arith.addf %145, %149 : vector<16x32xf32>
    %c0_44 = arith.constant 0 : index
    %c0_45 = arith.constant 0 : index
    %151 = vector.load %arg9[%c0_44, %c0_45] : memref<16x32xf32, #tpu.memory_space<vmem>>, vector<16x32xf32>
    tpu.vector_store %arg9[%c0_44, %c0_45], %150 {strides = array<i32>} : memref<16x32xf32, #tpu.memory_space<vmem>>, vector<16x32xf32>,
    return
  }
  func.func @transform_0(%arg0: i32) -> (i32, i32) {
    %c0_i32 = arith.constant 0 : i32
    %c0_i32_0 = arith.constant 0 : i32
    return %arg0, %c0_i32 : i32, i32
  }
  func.func @transform_1(%arg0: i32) -> (i32, i32) {
    %c0_i32 = arith.constant 0 : i32
    %c0_i32_0 = arith.constant 0 : i32
    return %arg0, %c0_i32 : i32, i32
  }
  func.func @transform_2(%arg0: i32) -> (i32, i32) {
    %c0_i32 = arith.constant 0 : i32
    %c0_i32_0 = arith.constant 0 : i32
    %c0_i32_1 = arith.constant 0 : i32
    return %c0_i32, %c0_i32_0 : i32, i32
  }
  func.func @transform_3(%arg0: i32) -> (i32, i32) {
    %c0_i32 = arith.constant 0 : i32
    %c0_i32_0 = arith.constant 0 : i32
    %c0_i32_1 = arith.constant 0 : i32
    return %c0_i32, %c0_i32_0 : i32, i32
  }
  func.func @transform_4(%arg0: i32) -> (i32, i32) {
    %c0_i32 = arith.constant 0 : i32
    %c0_i32_0 = arith.constant 0 : i32
    %c0_i32_1 = arith.constant 0 : i32
    return %c0_i32, %c0_i32_0 : i32, i32
  }
  func.func @transform_5(%arg0: i32) -> (i32, i32) {
    %c0_i32 = arith.constant 0 : i32
    %c0_i32_0 = arith.constant 0 : i32
    %c0_i32_1 = arith.constant 0 : i32
    return %c0_i32, %c0_i32_0 : i32, i32
  }
  func.func @transform_6(%arg0: i32) -> (i32, i32) {
    %c0_i32 = arith.constant 0 : i32
    %c0_i32_0 = arith.constant 0 : i32
    %c0_i32_1 = arith.constant 0 : i32
    return %c0_i32, %c0_i32_0 : i32, i32
  }
  func.func @transform_7(%arg0: i32) -> (i32, i32) {
    %c0_i32 = arith.constant 0 : i32
    %c0_i32_0 = arith.constant 0 : i32
    %c0_i32_1 = arith.constant 0 : i32
    return %c0_i32, %c0_i32_0 : i32, i32
  }
  func.func @transform_8(%arg0: i32) -> (i32, i32) {
    %c0_i32 = arith.constant 0 : i32
    %c0_i32_0 = arith.constant 0 : i32
    return %arg0, %c0_i32 : i32, i32
  }
}

</mosaic_0001>

<bundles_post_ra>
// kernel: tpu_custom_call.1
= control target key start
LH: loop header
LB: loop body
LE: loop exit
PB: predicated region body
PF: predicated region fallthrough
CT: control target
= control target key end

     0   :  { %13 = vsyncpa [#allocation3], 0  ;;  %s1263_s0 = inlined_call_operand.hbm [shape: f32[16,32], index: 0, kind: input, shape index: {}]   ;;  %s1264_s1 = inlined_call_operand.hbm [shape: f32[16,16], index: 1, kind: input, shape index: {}]   ;;  %s1265_s2 = inlined_call_operand.hbm [shape: f32[32,32], index: 2, kind: input, shape index: {}]   ;;  %s1266_s3 = inlined_call_operand.hbm [shape: f32[16,32], index: 3, kind: input, shape index: {}]   ;;  %s1267_s4 = inlined_call_operand.hbm [shape: f32[32,256], index: 4, kind: input, shape index: {}]   ;;  %s1268_s5 = inlined_call_operand.hbm [shape: f32[16,256], index: 5, kind: input, shape index: {}]   ;;  %s1269_s6 = inlined_call_operand.hbm [shape: f32[32,32], index: 6, kind: input, shape index: {}]   ;;  %s1270_s7 = inlined_call_operand.hbm [shape: f32[14,128], index: 7, kind: input, shape index: {}]   ;;  %s1271_s8 = inlined_call_operand.hbm [shape: f32[16,32], index: 8, kind: output, shape index: {}]  }
   0x1   :  { %14 = vsyncpa [#allocation6], 0 }
   0x2   :  { %15 = vsyncpa [#allocation9], 0 }
   0x3   :  { %16 = vsyncpa [#allocation12], 0 }
   0x4   :  { %17 = vsyncpa [#allocation15], 0 }
   0x5   :  { %18 = vsyncpa [#allocation4], 0  ;;  %s36_s29 = sshll.u32 %s1264_s1, 4  ;;  %s997_s30 = smov [#allocation5]   ;;  %s37_s29 = int_to_ptr.hbm [resolvable:$true] %s36_s29 }
   0x6   :  { %s38_s9 = sshll.u32 %s997_s30, 4  ;;  %s62_s12 = sshll.u32 %s1266_s3, 4  ;;  %s39_s9 = int_to_ptr.vmem [resolvable:$true] %s38_s9  ;;  %s63_s12 = int_to_ptr.hbm [resolvable:$true] %s62_s12 }
   0x7   :  { %s998_s13 = smov 128   ;;  %s999_s14 = smov 8  }
   0x8   :  { %44 = dma.hbm_to_vmem [thread:$0]  %s37_s29, 256, %s39_s9, [#allocation6], %s998_s13, %s998_s13, %s999_s14  }
   0x9   :  { %s1000_s15 = smov [#allocation8]   ;;  %s88_s18 = sshll.u32 %s1268_s5, 4  ;;  %s89_s18 = int_to_ptr.hbm [resolvable:$true] %s88_s18 }
   0xa   :  { %s64_s16 = sshll.u32 %s1000_s15, 4  ;;  %s1001_s3 = smov [#allocation11]   ;;  %s65_s16 = int_to_ptr.vmem [resolvable:$true] %s64_s16 }
   0xb   :  { %70 = dma.hbm_to_vmem [thread:$0]  %s63_s12, 256, %s65_s16, [#allocation9], %s998_s13, %s998_s13, %s999_s14  }
   0xc   :  { %s90_s19 = sshll.u32 %s1001_s3, 4  ;;  %s23_s22 = sshll.u32 %s1263_s0, 4  ;;  %s91_s19 = int_to_ptr.vmem [resolvable:$true] %s90_s19  ;;  %s24_s22 = int_to_ptr.hbm [resolvable:$true] %s23_s22 }
   0xd   :  { %s1002_s23 = smov 256   ;;  %s1003_s24 = smov 16  }
   0xe   :  { %96 = dma.hbm_to_vmem [thread:$0]  %s89_s18, 512, %s91_s19, [#allocation12], %s1002_s23, %s1002_s23, %s1003_s24  }
   0xf   :  { %s1004_s25 = smov [#allocation2]   ;;  %s49_s29 = sshll.u32 %s1265_s2, 4  ;;  %s50_s29 = int_to_ptr.hbm [resolvable:$true] %s49_s29 }
  0x10   :  { %s25_s26 = sshll.u32 %s1004_s25, 4  ;;  %s75_s0 = sshll.u32 %s1267_s4, 4  ;;  %s26_s26 = int_to_ptr.vmem [resolvable:$true] %s25_s26  ;;  %s76_s0 = int_to_ptr.hbm [resolvable:$true] %s75_s0 }
  0x11   :  { %31 = dma.hbm_to_vmem [thread:$0]  %s24_s22, 256, %s26_s26, [#allocation3], %s998_s13, %s998_s13, %s999_s14  }
  0x12   :  { %s1005_s9 = smov [#allocation7]   ;;  %s1006_s11 = smov [#allocation10]  }
  0x13   :  { %s51_s10 = sshll.u32 %s1005_s9, 4  ;;  %s77_s2 = sshll.u32 %s1006_s11, 4  ;;  %s52_s10 = int_to_ptr.vmem [resolvable:$true] %s51_s10  ;;  %s78_s2 = int_to_ptr.vmem [resolvable:$true] %s77_s2 }
  0x14   :  { %57 = dma.hbm_to_vmem [thread:$0]  %s50_s29, 512, %s52_s10, [#allocation6], %s998_s13, %s998_s13, %s999_s14  }
  0x15   :  { %s101_s16 = sshll.u32 %s1269_s6, 4  ;;  %s114_s4 = sshll.u32 %s1270_s7, 4  ;;  %s102_s16 = int_to_ptr.hbm [resolvable:$true] %s101_s16  ;;  %s115_s4 = int_to_ptr.hbm [resolvable:$true] %s114_s4 }
  0x16   :  { %83 = dma.hbm_to_vmem [thread:$0]  %s76_s0, 1024, %s78_s2, [#allocation9], %s1002_s23, %s1002_s23, %s1003_s24  }
  0x17   :  { %s1007_s18 = smov [#allocation13]   ;;  %s1008_s19 = smov [#allocation14]  }
  0x18   :  { %s103_s3 = sshll.u32 %s1007_s18, 4  ;;  %s116_s20 = sshll.u32 %s1008_s19, 4  ;;  %s104_s3 = int_to_ptr.vmem [resolvable:$true] %s103_s3  ;;  %s117_s20 = int_to_ptr.vmem [resolvable:$true] %s116_s20 }
  0x19   :  { %109 = dma.hbm_to_vmem [thread:$0]  %s102_s16, 512, %s104_s3, [#allocation12], %s998_s13, %s998_s13, %s999_s14  }
  0x1a   :  { %122 = dma.hbm_to_vmem [thread:$0]  %s115_s4, 256, %s117_s20, [#allocation15], %s998_s13, %s998_s13, %s999_s14  }
  0x1b   :  { %985 = dma.done.wait [#allocation3], 256  }
  0x1c   :  { %986 = vsyncadd [#allocation3], 4294967040 }
  0x1d   :  { %987 = dma.done.wait [#allocation6], 768  }
  0x1e   :  { %988 = vsyncadd [#allocation6], 4294966528 }
  0x1f   :  { %989 = dma.done.wait [#allocation9], 1280  }
  0x20   :  { %990 = vsyncadd [#allocation9], 4294966016 }
  0x21   :  { %991 = dma.done.wait [#allocation12], 1024  }
  0x22   :  { %992 = vsyncadd [#allocation12], 4294966272 }
  0x23   :  { %993 = dma.done.wait [#allocation15], 256  }
  0x24   :  { %994 = vsyncadd [#allocation15], 4294967040  ;;  %v393_v0 = vld [vmem:[#allocation11 + $0x10] sm:$0xff]  ;;  %v391_v1 = vld [vmem:[#allocation11] sm:$0xff]  ;;  %vm168_vm0 = vcmask 130048   ;;  %vm161_vm1 = vcmask 261120  }
  0x25   :  { %415 = vmatpush.msra.mxu2 %v393_v0  ;;  %v1101_v2 = vld [vmem:[#allocation5] sm:$0xff]  ;;  %v390_v3 = vld [vmem:[#allocation10 + $0x38] sm:$0xff]  ;;  %v392_v5 = vld [vmem:[#allocation11 + $0x8] sm:$0xff]  ;;  %v1009_v14 = vmov 48.0   ;;  %v1010_v47 = vmov 32.0   ;;  %s1013_s6 = smov [#allocation16]  }
  0x26   :  { %v394_v4 = vld [vmem:[#allocation11 + $0x18] sm:$0xff]  ;;  %v388_v7 = vld [vmem:[#allocation10 + $0x28] sm:$0xff]  ;;  %v1119_v13 = vld [vmem:[#allocation2] sm:$0xff]  ;;  %745 = vrcp.f32 %v1009_v14  ;;  %v169_v15 = vsel %vm168_vm0, %v1101_v2, 0.0  ;;  %s686_s7 = sshll.u32 %s1013_s6, 4  ;;  %s688_s23 = sshll.u32 %s1271_s8, 4  ;;  %s687_s7 = int_to_ptr.vmem [resolvable:$true] %s686_s7  ;;  %s689_s23 = int_to_ptr.hbm [resolvable:$true] %s688_s23 }
  0x27   :  { %416 = vmatpush.msra.mxu2 %v391_v1  ;;  %438 = vmatpush.msra.mxu3 %v394_v4  ;;  %v1103_v6 = vld [vmem:[#allocation2 + $0x8] sm:$0xff]  ;;  %v384_v10 = vld [vmem:[#allocation10 + $0x8] sm:$0xff]  ;;  %v162_v42 = vsel %vm161_vm1, %v1119_v13, 0.0  ;;  %747 = vrcp.f32 %v1010_v47  ;;  %v252_v60 = vld [vmem:[#allocation8] sm:$0xff] }
  0x28   :  { %713 = vmatmul.msk.f32.vlgmr.msra.gmra.mxu2 %vm168_vm0, %v1101_v2  ;;  %v165_v8 = vsel %vm161_vm1, %v1103_v6, 0.0  ;;  %v386_v9 = vld [vmem:[#allocation10 + $0x18] sm:$0xff]  ;;  %v1111_v11 = vld [vmem:[#allocation5 + $0x8] sm:$0xff]  ;;  %170 = vadd.xlane.f32.xlu2 %v169_v15 }
  0x29   :  { %488 = vmatpush.msrb.mxu2 %v390_v3  ;;  %439 = vmatpush.msra.mxu3 %v392_v5  ;;  %v172_v12 = vsel %vm168_vm0, %v1111_v11, 0.0  ;;  %v1140_v32 = vld [vmem:[#allocation14 + $0x8] sm:$0x3f]  ;;  %v253_v59 = vld [vmem:[#allocation8 + $0x8] sm:$0xff] }
  0x2a   :  { %715 = vmatmul.msk.f32.vlgmr.msra.gmra.mxu3 %vm168_vm0, %v1101_v2  ;;  %166 = vadd.xlane.f32.xlu0 %v165_v8  ;;  %v502_v33 = vperm.slane %v1140_v32, 0  ;;  %v249_v47 = vld [vmem:[#allocation7 + $0x8] sm:$0xff] }
  0x2b   :  { %489 = vmatpush.msrb.mxu2 %v388_v7  ;;  %723 = vmatpush.msra.mxu1 %v253_v59 }
  0x2c   :  { %v746_v17 = vpop.eup %745  ;;  %274 = vmatpush.msra.mxu0 %v253_v59 }
  0x2d   :  { %490 = vmatpush.msrb.mxu2 %v386_v9  ;;  %v178_v18 = vmul.f32 48.0, %v746_v17  ;;  %vm182_vm2 = vweird.f32 %v746_v17  ;;  %v748_v48 = vpop.eup %747  ;;  %724 = vmatpush.msra.mxu1 %v252_v60 }
  0x2e   :  { %v512_v49 = vmul.f32 32.0, %v748_v48  ;;  %vm516_vm3 = vweird.f32 %v748_v48  ;;  %275 = vmatpush.msra.mxu0 %v252_v60 }
  0x2f   :  { %491 = vmatpush.msrb.mxu2 %v384_v10  ;;  %v179_v19 = vsub.f32 1.0, %v178_v18 }
  0x30   :  { %714 = vmatmul.msk.f32.gmra.mxu2 %vm168_vm0, %v1111_v11  ;;  %v513_v50 = vsub.f32 1.0, %v512_v49  ;;  %v248_v49 = vld [vmem:[#allocation7] sm:$0xff] }
  0x31   :  { %v180_v20 = vmul.f32 %v746_v17, %v179_v19 }
  0x32   :  { %716 = vmatmul.msk.f32.gmra.mxu3 %vm168_vm0, %v1111_v11  ;;  %173 = vadd.xlane.f32.xlu0 %v172_v12  ;;  %v514_v51 = vmul.f32 %v748_v48, %v513_v50 }
  0x33   :  { %v181_v23 = vadd.f32 %v746_v17, %v180_v20 }
  0x34   :  { %v515_v52 = vadd.f32 %v748_v48, %v514_v51 }
  0x35   :  { %v1127_v24 = vsel %vm182_vm2, %v746_v17, %v181_v23 }
  0x36   :  { %v1153_v54 = vsel %vm516_vm3, %v748_v48, %v515_v52  ;;  %v389_v52 = vld [vmem:[#allocation10 + $0x30] sm:$0xff] }
  0x37   :  { %465 = vmatpush.msrb.mxu0 %v389_v52 }
  0x38   :  { %719 = vmatmul.msk.f32.vlgmr.msrb.gmra.mxu2 %vm161_vm1, %v1119_v13 }
  0x40   :  { %720 = vmatmul.msk.f32.gmra.mxu2 %vm161_vm1, %v1103_v6 }
  0x9b   :  { %v171_v53 = vpop.xlane.xlu2 %170 }
  0x9d   :  { %v167_v16 = vpop.xlane.xlu0 %166 }
  0xa5   :  { %v174_v21 = vpop.xlane.xlu0 %173 }
  0xa6   :  { %v176_v22 = vadd.f32 %v174_v21, %v167_v16 }
  0xa8   :  { %v185_v25 = vmul.f32 %v1127_v24, %v176_v22 }
  0xaa   :  { %v1133_v27 = vsub.f32 %v1103_v6, %v185_v25  ;;  %v1147_v43 = vsub.f32 %v1111_v11, %v185_v25 }
  0xab   :  { %v1130_v26 = vpop.f32.mrf.mxu2 }
  0xac   :  { %v191_v28 = vmul.f32 %v1133_v27, %v1133_v27  ;;  %v199_v45 = vmul.f32 %v1147_v43, %v1147_v43 }
  0xad   :  { %v441_v31 = vpop.f32.mrf.mxu3 }
  0xae   :  { %v195_v29 = vsel %vm161_vm1, %v191_v28, 0.0  ;;  %v203_v46 = vsel %vm168_vm0, %v199_v45, 0.0  ;;  %v250_v45 = vld [vmem:[#allocation7 + $0x10] sm:$0xff] }
  0xaf   :  { %196 = vadd.xlane.f32.xlu0 %v195_v29  ;;  %v1181_v29 = vld [vmem:[#allocation14] sm:$0xff] }
  0xb3   :  { %v1138_v30 = vpop.f32.mrf.mxu2 }
  0xb5   :  { %v444_v38 = vpop.f32.mrf.mxu3 }
  0xbb   :  { %v493_v34 = vpop.f32.mrf.mxu2 }
  0xbc   :  { %v494_v35 = vadd.f32 %v493_v34, %v441_v31 }
  0xbe   :  { %v503_v36 = vadd.f32 %v502_v33, %v494_v35 }
  0xc0   :  { %v505_v37 = vsel %vm161_vm1, %v503_v36, 0.0 }
  0xc1   :  { %506 = vadd.xlane.f32.xlu1 %v505_v37 }
  0xc3   :  { %v496_v39 = vpop.f32.mrf.mxu2 }
  0xc4   :  { %v497_v40 = vadd.f32 %v496_v39, %v444_v38  ;;  %v567_v39 = vld [vmem:[#allocation13 + $0x18] sm:$0xff] }
  0xc5   :  { %587 = vmatpush.msrb.mxu3 %v567_v39 }
  0xc6   :  { %v504_v41 = vadd.f32 %v502_v33, %v497_v40  ;;  %v242_v33 = vperm.slane %v1181_v29, 1  ;;  %v566_v40 = vld [vmem:[#allocation13 + $0x10] sm:$0xff] }
  0xc7   :  { %588 = vmatpush.msrb.mxu3 %v566_v40 }
  0xc8   :  { %v508_v44 = vsel %vm161_vm1, %v504_v41, 0.0 }
  0xc9   :  { %509 = vadd.xlane.f32.xlu2 %v508_v44  ;;  %163 = vadd.xlane.f32.xlu1 %v162_v42  ;;  %v564_v42 = vld [vmem:[#allocation13] sm:$0xff] }
  0xd1   :  { %204 = vadd.xlane.f32.xlu1 %v203_v46 }
 0x122   :  { %v197_v9 = vpop.xlane.xlu0 %196 }
 0x134   :  { %v507_v55 = vpop.xlane.xlu1 %506 }
 0x135   :  { %v518_v56 = vmul.f32 %v1153_v54, %v507_v55 }
 0x137   :  { %v1156_v57 = vsub.f32 %v503_v36, %v518_v56  ;;  %v245_v36 = vperm.slane %v1181_v29, 3 }
 0x139   :  { %v522_v58 = vmul.f32 %v1156_v57, %v1156_v57 }
 0x13b   :  { %v524_v61 = vsel %vm161_vm1, %v522_v58, 0.0 }
 0x13c   :  { %v510_v62 = vpop.xlane.xlu2 %509  ;;  %525 = vadd.xlane.f32.xlu2 %v524_v61  ;;  %v164_v63 = vpop.xlane.xlu1 %163  ;;  %v385_v61 = vld [vmem:[#allocation10 + $0x10] sm:$0xff] }
 0x13d   :  { %v519_v0 = vmul.f32 %v1153_v54, %v510_v62  ;;  %v175_v1 = vadd.f32 %v171_v53, %v164_v63  ;;  %v387_v53 = vld [vmem:[#allocation10 + $0x20] sm:$0xff] }
 0x13e   :  { %466 = vmatpush.msrb.mxu0 %v387_v53 }
 0x13f   :  { %v1162_v3 = vsub.f32 %v504_v41, %v519_v0  ;;  %v184_v4 = vmul.f32 %v1127_v24, %v175_v1  ;;  %v565_v41 = vld [vmem:[#allocation13 + $0x8] sm:$0xff]  ;;  %v383_v0 = vld [vmem:[#allocation10] sm:$0xff] }
 0x140   :  { %589 = vmatpush.msrb.mxu3 %v565_v41  ;;  %467 = vmatpush.msrb.mxu0 %v385_v61  ;;  %v317_v61 = vperm.slane %v1181_v29, 5 }
 0x141   :  { %v523_v5 = vmul.f32 %v1162_v3, %v1162_v3  ;;  %v1168_v7 = vsub.f32 %v1101_v2, %v184_v4  ;;  %v1171_v8 = vsub.f32 %v1119_v13, %v184_v4 }
 0x142   :  { %590 = vmatpush.msrb.mxu3 %v564_v42  ;;  %468 = vmatpush.msrb.mxu0 %v383_v0 }
 0x143   :  { %v527_v10 = vsel %vm161_vm1, %v523_v5, 0.0  ;;  %v198_v12 = vmul.f32 %v1168_v7, %v1168_v7  ;;  %v190_v14 = vmul.f32 %v1171_v8, %v1171_v8 }
 0x144   :  { %528 = vadd.xlane.f32.xlu2 %v527_v10  ;;  %v205_v15 = vpop.xlane.xlu1 %204 }
 0x145   :  { %v207_v16 = vadd.f32 %v205_v15, %v197_v9  ;;  %v200_v17 = vsel %vm168_vm0, %v198_v12, 0.0  ;;  %v192_v18 = vsel %vm161_vm1, %v190_v14, 0.0  ;;  %v556_v15 = vperm.slane %v1140_v32, 1 }
 0x146   :  { %201 = vadd.xlane.f32.xlu1 %v200_v17  ;;  %193 = vadd.xlane.f32.xlu0 %v192_v18 }
 0x147   :  { %v209_v19 = vmul.f32 %v207_v16, %v1127_v24 }
 0x149   :  { %v211_v20 = vadd.f32 1e-05, %v209_v19  ;;  %v559_v19 = vperm.slane %v1140_v32, 2 }
 0x14b   :  { %749 = vrsqrt.f32 %v211_v20  ;;  %vm228_vm4 = vweird.f32 %v211_v20 }
 0x151   :  { %v750_v21 = vpop.eup %749 }
 0x152   :  { %v223_v22 = vmul.f32 %v750_v21, %v211_v20  ;;  %vm229_vm5 = vweird.f32 %v750_v21 }
 0x153   :  { %vm230_vm6 = vmor %vm228_vm4, %vm229_vm5 }
 0x154   :  { %v224_v23 = vmul.f32 %v750_v21, %v223_v22 }
 0x156   :  { %v225_v25 = vmul.f32 0.5, %v224_v23 }
 0x158   :  { %v226_v28 = vsub.f32 1.5, %v225_v25 }
 0x15a   :  { %v227_v31 = vmul.f32 %v750_v21, %v226_v28 }
 0x15c   :  { %v1184_v34 = vsel %vm230_vm6, %v750_v21, %v227_v31 }
 0x15d   :  { %v241_v35 = vmul.f32 %v1184_v34, %v1147_v43  ;;  %v251_v43 = vld [vmem:[#allocation7 + $0x18] sm:$0xff] }
 0x15e   :  { %301 = vmatpush.msrb.mxu1 %v251_v43 }
 0x15f   :  { %v244_v37 = vmul.f32 %v242_v33, %v241_v35 }
 0x160   :  { %302 = vmatpush.msrb.mxu1 %v250_v45 }
 0x161   :  { %v247_v38 = vadd.f32 %v245_v36, %v244_v37 }
 0x162   :  { %303 = vmatpush.msrb.mxu1 %v249_v47 }
 0x163   :  { %706 = vmatmul.msk.f32.vlgmr.msra.gmra.mxu1 %vm168_vm0, %v247_v38 }
 0x164   :  { %304 = vmatpush.msrb.mxu1 %v248_v49 }
 0x1af   :  { %v526_v44 = vpop.xlane.xlu2 %525 }
 0x1b0   :  { %v530_v46 = vmul.f32 %v526_v44, %v1153_v54 }
 0x1b2   :  { %v532_v48 = vadd.f32 1e-05, %v530_v46  ;;  %v234_v46 = vperm.slane %v1181_v29, 0 }
 0x1b4   :  { %751 = vrsqrt.f32 %v532_v48  ;;  %vm540_vm8 = vweird.f32 %v532_v48 }
 0x1b7   :  { %v529_v50 = vpop.xlane.xlu2 %528 }
 0x1b8   :  { %v531_v51 = vmul.f32 %v529_v50, %v1153_v54  ;;  %v237_v50 = vperm.slane %v1181_v29, 2 }
 0x1b9   :  { %v194_v55 = vpop.xlane.xlu0 %193  ;;  %v202_v56 = vpop.xlane.xlu1 %201 }
 0x1ba   :  { %v752_v58 = vpop.eup %751  ;;  %v533_v59 = vadd.f32 1e-05, %v531_v51  ;;  %v206_v60 = vadd.f32 %v202_v56, %v194_v55 }
 0x1bb   :  { %v535_v62 = vmul.f32 %v752_v58, %v532_v48  ;;  %vm541_vm7 = vweird.f32 %v752_v58 }
 0x1bc   :  { %753 = vrsqrt.f32 %v533_v59  ;;  %v208_v63 = vmul.f32 %v206_v60, %v1127_v24  ;;  %vm542_vm9 = vmor %vm540_vm8, %vm541_vm7  ;;  %vm550_vm11 = vweird.f32 %v533_v59 }
 0x1bd   :  { %v536_v1 = vmul.f32 %v752_v58, %v535_v62 }
 0x1be   :  { %v210_v4 = vadd.f32 1e-05, %v208_v63 }
 0x1bf   :  { %v537_v5 = vmul.f32 0.5, %v536_v1 }
 0x1c0   :  { %755 = vrsqrt.f32 %v210_v4  ;;  %vm218_vm14 = vweird.f32 %v210_v4 }
 0x1c1   :  { %v538_v9 = vsub.f32 1.5, %v537_v5 }
 0x1c2   :  { %v754_v10 = vpop.eup %753 }
 0x1c3   :  { %v539_v12 = vmul.f32 %v752_v58, %v538_v9  ;;  %v545_v14 = vmul.f32 %v754_v10, %v533_v59  ;;  %vm551_vm10 = vweird.f32 %v754_v10 }
 0x1c4   :  { %vm552_vm12 = vmor %vm550_vm11, %vm551_vm10 }
 0x1c5   :  { %v543_v16 = vsel %vm542_vm9, %v752_v58, %v539_v12  ;;  %v546_v17 = vmul.f32 %v754_v10, %v545_v14  ;;  %v329_v12 = vand.u32 2147483647, %v1101_v2 }
 0x1c6   :  { %v756_v18 = vpop.eup %755  ;;  %v554_v24 = vmul.f32 %v543_v16, %v1156_v57 }
 0x1c7   :  { %v547_v20 = vmul.f32 0.5, %v546_v17  ;;  %v213_v21 = vmul.f32 %v756_v18, %v210_v4  ;;  %vm219_vm13 = vweird.f32 %v756_v18  ;;  %v331_v17 = vsel %vm168_vm0, %v329_v12, 0.0 }
 0x1c8   :  { %v557_v22 = vmul.f32 %v556_v15, %v554_v24  ;;  %vm220_vm15 = vmor %vm218_vm14, %vm219_vm13 }
 0x1c9   :  { %v548_v23 = vsub.f32 1.5, %v547_v20  ;;  %v214_v25 = vmul.f32 %v756_v18, %v213_v21 }
 0x1ca   :  { %v560_v28 = vadd.f32 %v559_v19, %v557_v22 }
 0x1cb   :  { %v549_v31 = vmul.f32 %v754_v10, %v548_v23  ;;  %v215_v35 = vmul.f32 0.5, %v214_v25  ;;  %v326_v23 = vperm.slane %v1181_v29, 6 }
 0x1cc   :  { %v562_v37 = vmax.f32 %v560_v28, 0.0 }
 0x1cd   :  { %v553_v38 = vsel %vm552_vm12, %v754_v10, %v549_v31  ;;  %v216_v39 = vsub.f32 1.5, %v215_v35  ;;  %v1011_v35 = vmov 0  }
 0x1ce   :  { %721 = vmatmul.msk.f32.vlgmr.msrb.gmra.mxu3 %vm161_vm1, %v562_v37  ;;  %v555_v57 = vmul.f32 %v553_v38, %v1162_v3  ;;  %742 = vset.pattern.permute.xlu2 %v1011_v35 }
 0x1cf   :  { %v217_v40 = vmul.f32 %v756_v18, %v216_v39  ;;  %744 = vset.pattern.permute.xlu1 %v1011_v35  ;;  %743 = vset.pattern.permute.xlu0 %v1011_v35 }
 0x1d0   :  { %v558_v41 = vmul.f32 %v556_v15, %v555_v57  ;;  %v330_v15 = vand.u32 2147483647, %v1111_v11 }
 0x1d1   :  { %v221_v42 = vsel %vm220_vm15, %v756_v18, %v217_v40 }
 0x1d2   :  { %v561_v44 = vadd.f32 %v559_v19, %v558_v41  ;;  %v232_v43 = vmul.f32 %v221_v42, %v1171_v8  ;;  %v240_v45 = vmul.f32 %v221_v42, %v1168_v7  ;;  %v233_v8 = vmul.f32 %v1184_v34, %v1133_v27 }
 0x1d3   :  { %v312_v34 = vperm.slane %v1181_v29, 4  ;;  %v334_v24 = vsel %vm168_vm0, %v330_v15, 0.0 }
 0x1d4   :  { %v563_v47 = vmax.f32 %v561_v44, 0.0  ;;  %v243_v48 = vmul.f32 %v242_v33, %v240_v45  ;;  %v235_v49 = vmul.f32 %v234_v46, %v232_v43  ;;  %v236_v7 = vmul.f32 %v234_v46, %v233_v8 }
 0x1d6   :  { %722 = vmatmul.msk.f32.gmra.mxu3 %vm161_vm1, %v563_v47  ;;  %v246_v3 = vadd.f32 %v245_v36, %v243_v48  ;;  %v238_v51 = vadd.f32 %v237_v50, %v235_v49  ;;  %v239_v52 = vadd.f32 %v237_v50, %v236_v7  ;;  %v568_v36 = vperm.slane %v1140_v32, 3 }
 0x1d8   :  { %705 = vmatmul.msk.f32.vlgmr.msra.gmra.mxu0 %vm168_vm0, %v246_v3  ;;  %707 = vmatmul.msk.f32.vlgmr.msrb.gmra.mxu1 %vm161_vm1, %v238_v51 }
 0x1e0   :  { %708 = vmatmul.msk.f32.gmra.mxu1 %vm161_vm1, %v239_v52  ;;  %717 = vmatmul.msk.f32.vlgmr.msrb.gmra.mxu0 %vm161_vm1, %v1119_v13  ;;  %v280_v33 = vpop.f32.mrf.mxu1 }
 0x1e8   :  { %718 = vmatmul.msk.f32.gmra.mxu0 %vm161_vm1, %v1103_v6 }
 0x251   :  { %v592_v53 = vpop.f32.mrf.mxu3 }
 0x252   :  { %v593_v55 = vadd.f32 %v592_v53, %v568_v36  ;;  %v1012_v53 = vmov 0.0  }
 0x254   :  { %v598_v27 = vsel %vm161_vm1, %v593_v55, 0.0 }
 0x255   :  { %599 = vadd.xlane.f32.xlu0 %v598_v27  ;;  %v277_v56 = vpop.f32.mrf.mxu0  ;;  %v306_v58 = vpop.f32.mrf.mxu1 }
 0x256   :  { %v307_v59 = vadd.f32 %v306_v58, %v277_v56 }
 0x258   :  { %v313_v60 = vadd.f32 %v312_v34, %v307_v59 }
 0x259   :  { %v595_v62 = vpop.f32.mrf.mxu3 }
 0x25a   :  { %v315_v63 = vmax.f32 %v313_v60, 0.0  ;;  %v596_v0 = vadd.f32 %v595_v62, %v568_v36 }
 0x25c   :  { %v601_v1 = vsel %vm161_vm1, %v596_v0, 0.0  ;;  %v318_v4 = vmul.f32 %v317_v61, %v315_v63 }
 0x25d   :  { %602 = vadd.xlane.f32.xlu1 %v601_v1  ;;  %v309_v5 = vpop.f32.mrf.mxu1 }
 0x25e   :  { %v310_v9 = vadd.f32 %v309_v5, %v280_v33  ;;  %v320_v10 = vsel %vm161_vm1, %v318_v4, 0.0 }
 0x25f   :  { %321 = vadd.xlane.f32.xlu2 %v320_v10 }
 0x260   :  { %v314_v14 = vadd.f32 %v312_v34, %v310_v9 }
 0x262   :  { %v316_v16 = vmax.f32 %v314_v14, 0.0 }
 0x264   :  { %v319_v18 = vmul.f32 %v317_v61, %v316_v16 }
 0x265   :  { %332 = vadd.xlane.f32.xlu1 %v331_v17 }
 0x266   :  { %v323_v19 = vsel %vm161_vm1, %v319_v18, 0.0 }
 0x267   :  { %324 = vadd.xlane.f32.xlu0 %v323_v19  ;;  %335 = vadd.xlane.f32.xlu2 %v334_v24 }
 0x2c8   :  { %v600_v20 = vpop.xlane.xlu0 %599 }
 0x2c9   :  { %v604_v21 = vmul.f32 %v600_v20, %v1153_v54 }
 0x2cb   :  { %v1232_v22 = vsub.f32 %v593_v55, %v604_v21 }
 0x2cd   :  { %v608_v2 = vmul.f32 %v1232_v22, %v1232_v22 }
 0x2cf   :  { %v610_v11 = vsel %vm161_vm1, %v608_v2, 0.0 }
 0x2d0   :  { %611 = vadd.xlane.f32.xlu0 %v610_v11  ;;  %v603_v25 = vpop.xlane.xlu1 %602 }
 0x2d1   :  { %v605_v28 = vmul.f32 %v603_v25, %v1153_v54 }
 0x2d2   :  { %v322_v31 = vpop.xlane.xlu2 %321 }
 0x2d3   :  { %v1239_v37 = vsub.f32 %v596_v0, %v605_v28  ;;  %v327_v38 = vadd.f32 %v326_v23, %v322_v31 }
 0x2d5   :  { %v711_v39 = vmul.f32 -1.442695, %v327_v38  ;;  %v609_v57 = vmul.f32 %v1239_v37, %v1239_v37  ;;  %v642_v38 = vperm.slane %v1140_v32, 4 }
 0x2d7   :  { %757 = vpow2.f32 %v711_v39  ;;  %v613_v40 = vsel %vm161_vm1, %v609_v57, 0.0 }
 0x2d8   :  { %614 = vadd.xlane.f32.xlu1 %v613_v40  ;;  %v333_v50 = vpop.xlane.xlu1 %332  ;;  %v499_v40 = vperm.slane %v1181_v29, 7 }
 0x2d9   :  { %vm337_vm2 = vcmp.ne.f32.partialorder %v333_v50, 0.0 }
 0x2da   :  { %v325_v41 = vpop.xlane.xlu0 %324  ;;  %v709_v55 = vsel %vm337_vm2, 1.0, %v1012_v53  ;;  %v336_v56 = vpop.xlane.xlu2 %335 }
 0x2db   :  { %v328_v42 = vadd.f32 %v326_v23, %v325_v41  ;;  %vm338_vm6 = vcmp.ne.f32.partialorder %v336_v56, 0.0  ;;  %v470_v23 = vpop.f32.mrf.mxu0 }
 0x2dc   :  { %v710_v5 = vsel %vm338_vm6, 1.0, %v1012_v53 }
 0x2dd   :  { %v758_v44 = vpop.eup %757  ;;  %v712_v43 = vmul.f32 -1.442695, %v328_v42  ;;  %v645_v42 = vperm.slane %v1140_v32, 5 }
 0x2de   :  { %v349_v45 = vadd.f32 1.0, %v758_v44 }
 0x2df   :  { %759 = vpow2.f32 %v712_v43 }
 0x2e0   :  { %761 = vrcp.f32 %v349_v45  ;;  %v362_v51 = vand.u32 2147483648, %v349_v45  ;;  %v360_v7 = vand.u32 2147483647, %v349_v45  ;;  %vm356_vm3 = vweird.f32 %v349_v45 }
 0x2e2   :  { %v363_v36 = vor.u32 1.1754944e-38, %v362_v51  ;;  %vm361_vm5 = vcmp.eq.f32.partialorder %v360_v7, 8.507059e+37 }
 0x2e5   :  { %v760_v46 = vpop.eup %759 }
 0x2e6   :  { %v762_v47 = vpop.eup %761  ;;  %v350_v48 = vadd.f32 1.0, %v760_v46 }
 0x2e7   :  { %v352_v49 = vmul.f32 %v762_v47, %v349_v45  ;;  %vm357_vm0 = vweird.f32 %v762_v47 }
 0x2e8   :  { %763 = vrcp.f32 %v350_v48  ;;  %vm358_vm4 = vmor %vm356_vm3, %vm357_vm0  ;;  %v377_v61 = vand.u32 2147483648, %v350_v48  ;;  %v375_v0 = vand.u32 2147483647, %v350_v48  ;;  %vm371_vm8 = vweird.f32 %v350_v48 }
 0x2e9   :  { %v353_v3 = vsub.f32 1.0, %v352_v49 }
 0x2ea   :  { %v378_v4 = vor.u32 1.1754944e-38, %v377_v61  ;;  %vm376_vm10 = vcmp.eq.f32.partialorder %v375_v0, 8.507059e+37 }
 0x2eb   :  { %v354_v8 = vmul.f32 %v762_v47, %v353_v3 }
 0x2ed   :  { %v355_v52 = vadd.f32 %v762_v47, %v354_v8 }
 0x2ee   :  { %v764_v33 = vpop.eup %763 }
 0x2ef   :  { %v359_v27 = vsel %vm358_vm4, %v762_v47, %v355_v52  ;;  %v367_v34 = vmul.f32 %v764_v33, %v350_v48  ;;  %vm372_vm7 = vweird.f32 %v764_v33  ;;  %v473_v48 = vpop.f32.mrf.mxu0 }
 0x2f0   :  { %v364_v58 = vsel %vm361_vm5, %v363_v36, %v359_v27  ;;  %vm373_vm9 = vmor %vm371_vm8, %vm372_vm7 }
 0x2f1   :  { %v381_v59 = vmul.f32 %v709_v55, %v364_v58  ;;  %v368_v60 = vsub.f32 1.0, %v367_v34 }
 0x2f3   :  { %654 = vperm.xlu2 %742, %v381_v59   ;;  %v664_v62 = vsub.f32 1.0, %v381_v59  ;;  %v369_v63 = vmul.f32 %v764_v33, %v368_v60 }
 0x2f5   :  { %668 = vperm.xlu1 %744, %v664_v62   ;;  %v370_v1 = vadd.f32 %v764_v33, %v369_v63 }
 0x2f7   :  { %v374_v9 = vsel %vm373_vm9, %v764_v33, %v370_v1 }
 0x2f8   :  { %v379_v10 = vsel %vm376_vm10, %v378_v4, %v374_v9 }
 0x2f9   :  { %v382_v12 = vmul.f32 %v710_v5, %v379_v10 }
 0x2fb   :  { %659 = vperm.xlu0 %743, %v382_v12   ;;  %v665_v14 = vsub.f32 1.0, %v382_v12 }
 0x2fd   :  { %673 = vperm.xlu2 %742, %v665_v14  }
 0x343   :  { %v612_v15 = vpop.xlane.xlu0 %611 }
 0x344   :  { %v616_v16 = vmul.f32 %v612_v15, %v1153_v54 }
 0x346   :  { %v618_v17 = vadd.f32 1e-05, %v616_v16 }
 0x348   :  { %765 = vrsqrt.f32 %v618_v17  ;;  %vm626_vm12 = vweird.f32 %v618_v17 }
 0x34b   :  { %v615_v18 = vpop.xlane.xlu1 %614 }
 0x34c   :  { %v617_v24 = vmul.f32 %v615_v18, %v1153_v54  ;;  %v471_v54 = vadd.f32 %v470_v23, %v1130_v26  ;;  %v474_v26 = vadd.f32 %v473_v48, %v1138_v30 }
 0x34d   :  { %v655_v51 = vpop.permute.xlu2 %654 }
 0x34e   :  { %v766_v19 = vpop.eup %765  ;;  %v619_v20 = vadd.f32 1e-05, %v617_v24  ;;  %v500_v46 = vadd.f32 %v499_v40, %v471_v54  ;;  %v501_v32 = vadd.f32 %v499_v40, %v474_v26 }
 0x34f   :  { %v621_v21 = vmul.f32 %v766_v19, %v618_v17  ;;  %vm627_vm11 = vweird.f32 %v766_v19 }
 0x350   :  { %767 = vrsqrt.f32 %v619_v20  ;;  %vm628_vm13 = vmor %vm626_vm12, %vm627_vm11  ;;  %vm636_vm15 = vweird.f32 %v619_v20 }
 0x351   :  { %v622_v2 = vmul.f32 %v766_v19, %v621_v21 }
 0x353   :  { %v623_v11 = vmul.f32 0.5, %v622_v2 }
 0x355   :  { %v624_v25 = vsub.f32 1.5, %v623_v11 }
 0x356   :  { %v768_v28 = vpop.eup %767 }
 0x357   :  { %v625_v31 = vmul.f32 %v766_v19, %v624_v25  ;;  %v631_v35 = vmul.f32 %v768_v28, %v619_v20  ;;  %vm637_vm14 = vweird.f32 %v768_v28  ;;  %v674_v27 = vpop.permute.xlu2 %673 }
 0x358   :  { %vm638_vm0 = vmor %vm636_vm15, %vm637_vm14  ;;  %v677_v30 = vmul.f32 %v674_v27, %v1103_v6 }
 0x359   :  { %v629_v39 = vsel %vm628_vm13, %v766_v19, %v625_v31  ;;  %v632_v57 = vmul.f32 %v768_v28, %v631_v35 }
 0x35a   :  { %v640_v41 = vmul.f32 %v629_v39, %v1232_v22 }
 0x35b   :  { %v633_v44 = vmul.f32 0.5, %v632_v57 }
 0x35c   :  { %v643_v43 = vmul.f32 %v642_v38, %v640_v41 }
 0x35d   :  { %v634_v45 = vsub.f32 1.5, %v633_v44 }
 0x35e   :  { %v646_v47 = vadd.f32 %v645_v42, %v643_v43 }
 0x35f   :  { %v635_v49 = vmul.f32 %v768_v28, %v634_v45 }
 0x360   :  { %v648_v50 = vadd.f32 %v646_v47, %v500_v46 }
 0x361   :  { %v639_v3 = vsel %vm638_vm0, %v768_v28, %v635_v49 }
 0x362   :  { %v641_v29 = vmul.f32 %v639_v3, %v1239_v37  ;;  %v650_v22 = vmax.f32 %v648_v50, 0.0 }
 0x364   :  { %v644_v8 = vmul.f32 %v642_v38, %v641_v29  ;;  %v662_v33 = vmul.f32 %v655_v51, %v650_v22 }
 0x366   :  { %v647_v7 = vadd.f32 %v645_v42, %v644_v8 }
 0x367   :  { %v669_v52 = vpop.permute.xlu1 %668 }
 0x368   :  { %v676_v36 = vmul.f32 %v669_v52, %v1119_v13  ;;  %v649_v53 = vadd.f32 %v647_v7, %v501_v32 }
 0x36a   :  { %v678_v55 = vadd.f32 %v676_v36, %v662_v33  ;;  %v651_v34 = vmax.f32 %v649_v53, 0.0 }
 0x36c   :  { %680 = vst.msk [vmem:[#allocation16] sm:$0xff] %vm161_vm1, %v678_v55 }
 0x36d   :  { %v660_v56 = vpop.permute.xlu0 %659 }
 0x36e   :  { %v663_v37 = vmul.f32 %v660_v56, %v651_v34 }
 0x370   :  { %v679_v58 = vadd.f32 %v677_v30, %v663_v37 }
 0x372   :  { %681 = vst.msk [vmem:[#allocation16 + $0x8] sm:$0xff] %vm161_vm1, %v679_v58 }
 0x373   :  { %694 = dma.vmem_to_hbm [thread:$0]  %s687_s7, 256, %s689_s23, [#allocation4], %s998_s13, %s998_s13, %s999_s14  }
 0x374   :  { %995 = dma.done.wait [#allocation4], 256  }
 0x375   :  { %996 = vsyncadd [#allocation4], 4294967040 }
 0x376   :  { %699 = vsyncpa [#allocation3], 1 }
 0x377   :  { %700 = vsyncpa [#allocation6], 1 }
 0x378   :  { %701 = vsyncpa [#allocation9], 1 }
 0x379   :  { %702 = vsyncpa [#allocation12], 1 }
 0x37a   :  { %703 = vsyncpa [#allocation15], 1 }
 0x37b   :  { %704 = vsyncpa [#allocation4], 1 }

</bundles_post_ra>
